<compile_context>
chip_gen: v7x
topology: tpu7x:2x2x1
jax: 0.10.0
libtpu: 0.0.40
codegen_flags: <defaults>
</compile_context>

<pallas_src>
import math
import functools

import jax
import jax.numpy as jnp
from jax import lax
from jax.experimental import pallas as pl
from jax.experimental.pallas import tpu as pltpu


# Fixed temporal-embedding layout (freq='h'): [hour | weekday | day | month]
HOUR_SIZE, WEEKDAY_SIZE, DAY_SIZE, MONTH_SIZE = 24, 7, 32, 13
TABLE_ROWS = HOUR_SIZE + WEEKDAY_SIZE + DAY_SIZE + MONTH_SIZE  # 76
# (column in x_mark, row offset into the fused table)
_FEATURE_OFFSETS = (
    (3, 0),                                      # hour
    (2, HOUR_SIZE),                              # weekday
    (1, HOUR_SIZE + WEEKDAY_SIZE),               # day
    (0, HOUR_SIZE + WEEKDAY_SIZE + DAY_SIZE),    # month
)


# ---------------------------------------------------------------------------
# Pallas kernel: fused circular conv-as-matmul + temporal one-hot gather + add
# ---------------------------------------------------------------------------
def embed_kernel(x_ref, xmark_ref, w_ref, table_ref, o_ref):
    # x_ref:     (1, L, c_in)   f32, one batch element (full sequence)
    # xmark_ref: (1, L, 4)      int32 [month, day, weekday, hour]
    # w_ref:     (3, c_in, D)   conv taps, VMEM-resident across the grid
    # table_ref: (76, D)        fused fixed sin/cos tables, VMEM-resident
    # o_ref:     (1, L, D)
    x = x_ref[0]                                   # (L, c_in)
    L = x.shape[0]

    # --- TokenEmbedding: circular Conv1d(k=3, pad=1, no bias) ---
    # out[t] = x[t-1] @ W0 + x[t] @ W1 + x[t+1] @ W2   (circular in t)
    x_prev = pltpu.roll(x, shift=1, axis=0)        # row t holds x[t-1]
    x_next = pltpu.roll(x, shift=L - 1, axis=0)    # row t holds x[t+1]
    acc = jnp.dot(x_prev, w_ref[0], preferred_element_type=jnp.float32)
    acc += jnp.dot(x, w_ref[1], preferred_element_type=jnp.float32)
    acc += jnp.dot(x_next, w_ref[2], preferred_element_type=jnp.float32)

    # --- TemporalEmbedding (fixed, freq='h'): 4 lookups as one one-hot matmul ---
    xm = xmark_ref[0]                              # (L, 4) int32
    col = lax.broadcasted_iota(jnp.int32, (L, TABLE_ROWS), 1)
    onehot = jnp.zeros((L, TABLE_ROWS), jnp.float32)
    for feat, off in _FEATURE_OFFSETS:
        idx = xm[:, feat:feat + 1] + off           # (L, 1), disjoint row ranges
        onehot = onehot + (col == idx).astype(jnp.float32)
    acc += jnp.dot(onehot, table_ref[...], preferred_element_type=jnp.float32)

    # Dropout(p=0.1) is identity in eval mode.
    o_ref[0] = acc.astype(o_ref.dtype)


def data_embedding_wo_pos_pallas(x, x_mark, w_taps, table):
    B, L, c_in = x.shape
    D = w_taps.shape[-1]
    flops = int(2 * B * L * (3 * c_in + TABLE_ROWS) * D)
    bytes_accessed = int(
        x.size * 4 + x_mark.size * 4 + w_taps.size * 4 + table.size * 4
        + B * L * D * 4
    )
    return pl.pallas_call(
        embed_kernel,
        out_shape=jax.ShapeDtypeStruct((B, L, D), jnp.float32),
        grid=(B,),
        in_specs=[
            pl.BlockSpec((1, L, c_in), lambda b: (b, 0, 0)),        # x tile
            pl.BlockSpec((1, L, 4), lambda b: (b, 0, 0)),           # x_mark tile
            pl.BlockSpec((3, c_in, D), lambda b: (0, 0, 0)),        # weights: resident
            pl.BlockSpec((TABLE_ROWS, D), lambda b: (0, 0)),        # tables: resident
        ],
        out_specs=pl.BlockSpec((1, L, D), lambda b: (b, 0, 0)),
        compiler_params=pltpu.CompilerParams(
            dimension_semantics=("parallel",),   # megacore-shard batch on v7x
        ),
        cost_estimate=pl.CostEstimate(
            flops=flops, transcendentals=0, bytes_accessed=bytes_accessed
        ),
    )(x, x_mark, w_taps, table)


# ---------------------------------------------------------------------------
# Parameter construction (deterministic, mirrors the PyTorch __init__)
# ---------------------------------------------------------------------------
def fixed_sincos_table(c_in, d_model):
    """FixedEmbedding weight: (c_in, d_model) sin/cos table."""
    position = jnp.arange(c_in, dtype=jnp.float32)[:, None]
    div_term = jnp.exp(
        jnp.arange(0, d_model, 2, dtype=jnp.float32) * (-(math.log(10000.0) / d_model))
    )
    w = jnp.zeros((c_in, d_model), dtype=jnp.float32)
    w = w.at[:, 0::2].set(jnp.sin(position * div_term))
    w = w.at[:, 1::2].set(jnp.cos(position * div_term))
    return w


def make_params(key, c_in, d_model):
    # TokenEmbedding conv weight (d_model, c_in, 3), kaiming_normal fan_in / leaky_relu
    fan_in = c_in * 3
    std = math.sqrt(2.0 / fan_in)
    conv_w = jax.random.normal(key, (d_model, c_in, 3), dtype=jnp.float32) * std
    tables = {
        "hour": fixed_sincos_table(HOUR_SIZE, d_model),
        "weekday": fixed_sincos_table(WEEKDAY_SIZE, d_model),
        "day": fixed_sincos_table(DAY_SIZE, d_model),
        "month": fixed_sincos_table(MONTH_SIZE, d_model),
    }
    return conv_w, tables


# ---------------------------------------------------------------------------
# Forward wrapper (layout prep in plain JAX; all heavy math in the Pallas kernel)
# ---------------------------------------------------------------------------
@functools.partial(jax.jit, static_argnames=())
def data_embedding_wo_pos(x, x_mark, conv_w, hour_t, weekday_t, day_t, month_t):
    # w_taps[k, c, d] = conv_w[d, c, k]
    w_taps = jnp.transpose(conv_w, (2, 1, 0))                    # (3, c_in, D)
    # Fused fixed-table: rows [hour | weekday | day | month]
    table = jnp.concatenate([hour_t, weekday_t, day_t, month_t], axis=0)  # (76, D)
    out = data_embedding_wo_pos_pallas(
        x.astype(jnp.float32), x_mark.astype(jnp.int32), w_taps, table
    )
    return out


# ---------------------------------------------------------------------------
if __name__ == "__main__":
    B, L, c_in, d_model = 2, 16, 7, 128

    key = jax.random.PRNGKey(0)
    k_x, k_w, k_m = jax.random.split(key, 3)

    x = jax.random.normal(k_x, (B, L, c_in), dtype=jnp.float32)
    # time features: [month(0..12), day(0..31), weekday(0..6), hour(0..23)]
    km, kd, kw2, kh = jax.random.split(k_m, 4)
    x_mark = jnp.stack(
        [
            jax.random.randint(km, (B, L), 0, MONTH_SIZE),
            jax.random.randint(kd, (B, L), 0, DAY_SIZE),
            jax.random.randint(kw2, (B, L), 0, WEEKDAY_SIZE),
            jax.random.randint(kh, (B, L), 0, HOUR_SIZE),
        ],
        axis=-1,
    ).astype(jnp.int32)

    conv_w, tabs = make_params(k_w, c_in, d_model)

    out = data_embedding_wo_pos(
        x, x_mark, conv_w, tabs["hour"], tabs["weekday"], tabs["day"], tabs["month"]
    )
    out = jax.block_until_ready(out)

    # Pure-JAX reference of the same forward semantics
    x_unf = jnp.concatenate(
        [jnp.roll(x, 1, axis=1), x, jnp.roll(x, -1, axis=1)], axis=-1
    ).reshape(B * L, 3 * c_in)
    w_flat = jnp.transpose(conv_w, (2, 1, 0)).reshape(3 * c_in, d_model)
    token = (x_unf @ w_flat).reshape(B, L, d_model)
    temporal = (
        tabs["hour"][x_mark[:, :, 3]]
        + tabs["weekday"][x_mark[:, :, 2]]
        + tabs["day"][x_mark[:, :, 1]]
        + tabs["month"][x_mark[:, :, 0]]
    )
    ref = token + temporal

    assert out.shape == (B, L, d_model)
    # tolerance covers MXU f32 multi-pass / reduced-precision accumulation paths
    max_err = float(jnp.max(jnp.abs(out - ref)))
    assert jnp.allclose(out, ref, atol=2e-2, rtol=2e-2), f"max_err={max_err}"
    print("KERNEL_OK")
</pallas_src>

<mosaic_0001>
module attributes {stable_mosaic.version = 11 : i64} {
  func.func @embed_kernel(%arg0: i32, %arg1: memref<1x16x7xf32, #tpu.memory_space<vmem>>, %arg2: memref<1x16x4xi32, #tpu.memory_space<vmem>>, %arg3: memref<3x7x128xf32, #tpu.memory_space<vmem>>, %arg4: memref<76x128xf32, #tpu.memory_space<vmem>>, %arg5: memref<1x16x128xf32, #tpu.memory_space<vmem>>) attributes {dimension_semantics = [#tpu.dimension_semantics<parallel>], iteration_bounds = array<i64: 2>, scalar_prefetch = 0 : i64, scratch_operands = 0 : i64, tpu.core_type = #tpu.core_type<tc>, window_params = [{transform_indices = @transform_0, window_bounds = array<i64: 1, 16, 7>}, {transform_indices = @transform_1, window_bounds = array<i64: 1, 16, 4>}, {pipeline_mode = #tpu.pipeline_mode<synchronous>, transform_indices = @transform_2, window_bounds = array<i64: 3, 7, 128>}, {pipeline_mode = #tpu.pipeline_mode<synchronous>, transform_indices = @transform_3, window_bounds = array<i64: 76, 128>}, {transform_indices = @transform_4, window_bounds = array<i64: 1, 16, 128>}]} {
    %c0 = arith.constant 0 : index
    %c0_0 = arith.constant 0 : index
    %c0_1 = arith.constant 0 : index
    %0 = vector.load %arg1[%c0, %c0_0, %c0_1] : memref<1x16x7xf32, #tpu.memory_space<vmem>>, vector<1x16x7xf32>
    %1 = vector.shape_cast %0 : vector<1x16x7xf32> to vector<16x7xf32>
    %c1_i32 = arith.constant 1 : i32
    %2 = tpu.dynamic_rotate %1 by %c1_i32 dim 0 : vector<16x7xf32>, i32 -> vector<16x7xf32>
    %c15_i32 = arith.constant 15 : i32
    %3 = tpu.dynamic_rotate %1 by %c15_i32 dim 0 : vector<16x7xf32>, i32 -> vector<16x7xf32>
    %c0_2 = arith.constant 0 : index
    %c0_3 = arith.constant 0 : index
    %c0_4 = arith.constant 0 : index
    %4 = vector.load %arg3[%c0_2, %c0_3, %c0_4] : memref<3x7x128xf32, #tpu.memory_space<vmem>>, vector<1x7x128xf32>
    %5 = vector.shape_cast %4 : vector<1x7x128xf32> to vector<7x128xf32>
    %cst = arith.constant dense<0.000000e+00> : vector<16x128xf32>
    %6 = tpu.matmul %2, %5, %cst {dimension_numbers = #tpu.dot_dimension_numbers<[1], [0], [0], [1], [0, 0, 1, 1], [], []>} : vector<16x7xf32>, vector<7x128xf32>, vector<16x128xf32> -> vector<16x128xf32>
    %c1 = arith.constant 1 : index
    %c0_5 = arith.constant 0 : index
    %c0_6 = arith.constant 0 : index
    %7 = vector.load %arg3[%c1, %c0_5, %c0_6] : memref<3x7x128xf32, #tpu.memory_space<vmem>>, vector<1x7x128xf32>
    %8 = vector.shape_cast %7 : vector<1x7x128xf32> to vector<7x128xf32>
    %cst_7 = arith.constant dense<0.000000e+00> : vector<16x128xf32>
    %9 = tpu.matmul %1, %8, %cst_7 {dimension_numbers = #tpu.dot_dimension_numbers<[1], [0], [0], [1], [0, 0, 1, 1], [], []>} : vector<16x7xf32>, vector<7x128xf32>, vector<16x128xf32> -> vector<16x128xf32>
    %10 = arith.addf %6, %9 : vector<16x128xf32>
    %c2 = arith.constant 2 : index
    %c0_8 = arith.constant 0 : index
    %c0_9 = arith.constant 0 : index
    %11 = vector.load %arg3[%c2, %c0_8, %c0_9] : memref<3x7x128xf32, #tpu.memory_space<vmem>>, vector<1x7x128xf32>
    %12 = vector.shape_cast %11 : vector<1x7x128xf32> to vector<7x128xf32>
    %cst_10 = arith.constant dense<0.000000e+00> : vector<16x128xf32>
    %13 = tpu.matmul %3, %12, %cst_10 {dimension_numbers = #tpu.dot_dimension_numbers<[1], [0], [0], [1], [0, 0, 1, 1], [], []>} : vector<16x7xf32>, vector<7x128xf32>, vector<16x128xf32> -> vector<16x128xf32>
    %14 = arith.addf %10, %13 : vector<16x128xf32>
    %c0_11 = arith.constant 0 : index
    %c0_12 = arith.constant 0 : index
    %c0_13 = arith.constant 0 : index
    %15 = vector.load %arg2[%c0_11, %c0_12, %c0_13] : memref<1x16x4xi32, #tpu.memory_space<vmem>>, vector<1x16x4xi32>
    %16 = vector.shape_cast %15 : vector<1x16x4xi32> to vector<16x4xi32>
    %17 = tpu.iota {dimensions = array<i32: 1>} : vector<16x76xi32>
    %cst_14 = arith.constant 0.000000e+00 : f32
    %18 = vector.broadcast %cst_14 : f32 to vector<16x76xf32>
    %19 = vector.extract_strided_slice %16 {offsets = [0, 3], sizes = [16, 1], strides = [1, 1]} : vector<16x4xi32> to vector<16x1xi32>
    %c0_i32 = arith.constant 0 : i32
    %20 = vector.broadcast %c0_i32 : i32 to vector<16x1xi32>
    %21 = arith.addi %19, %20 : vector<16x1xi32>
    %22 = vector.broadcast %21 : vector<16x1xi32> to vector<16x76xi32>
    %23 = arith.cmpi eq, %17, %22 : vector<16x76xi32>
    %24 = arith.extui %23 : vector<16x76xi1> to vector<16x76xi32>
    %25 = arith.sitofp %24 : vector<16x76xi32> to vector<16x76xf32>
    %26 = arith.addf %18, %25 : vector<16x76xf32>
    %27 = vector.extract_strided_slice %16 {offsets = [0, 2], sizes = [16, 1], strides = [1, 1]} : vector<16x4xi32> to vector<16x1xi32>
    %c24_i32 = arith.constant 24 : i32
    %28 = vector.broadcast %c24_i32 : i32 to vector<16x1xi32>
    %29 = arith.addi %27, %28 : vector<16x1xi32>
    %30 = vector.broadcast %29 : vector<16x1xi32> to vector<16x76xi32>
    %31 = arith.cmpi eq, %17, %30 : vector<16x76xi32>
    %32 = arith.extui %31 : vector<16x76xi1> to vector<16x76xi32>
    %33 = arith.sitofp %32 : vector<16x76xi32> to vector<16x76xf32>
    %34 = arith.addf %26, %33 : vector<16x76xf32>
    %35 = vector.extract_strided_slice %16 {offsets = [0, 1], sizes = [16, 1], strides = [1, 1]} : vector<16x4xi32> to vector<16x1xi32>
    %c31_i32 = arith.constant 31 : i32
    %36 = vector.broadcast %c31_i32 : i32 to vector<16x1xi32>
    %37 = arith.addi %35, %36 : vector<16x1xi32>
    %38 = vector.broadcast %37 : vector<16x1xi32> to vector<16x76xi32>
    %39 = arith.cmpi eq, %17, %38 : vector<16x76xi32>
    %40 = arith.extui %39 : vector<16x76xi1> to vector<16x76xi32>
    %41 = arith.sitofp %40 : vector<16x76xi32> to vector<16x76xf32>
    %42 = arith.addf %34, %41 : vector<16x76xf32>
    %43 = vector.extract_strided_slice %16 {offsets = [0, 0], sizes = [16, 1], strides = [1, 1]} : vector<16x4xi32> to vector<16x1xi32>
    %c63_i32 = arith.constant 63 : i32
    %44 = vector.broadcast %c63_i32 : i32 to vector<16x1xi32>
    %45 = arith.addi %43, %44 : vector<16x1xi32>
    %46 = vector.broadcast %45 : vector<16x1xi32> to vector<16x76xi32>
    %47 = arith.cmpi eq, %17, %46 : vector<16x76xi32>
    %48 = arith.extui %47 : vector<16x76xi1> to vector<16x76xi32>
    %49 = arith.sitofp %48 : vector<16x76xi32> to vector<16x76xf32>
    %50 = arith.addf %42, %49 : vector<16x76xf32>
    %c0_15 = arith.constant 0 : index
    %c0_16 = arith.constant 0 : index
    %51 = vector.load %arg4[%c0_15, %c0_16] : memref<76x128xf32, #tpu.memory_space<vmem>>, vector<76x128xf32>
    %cst_17 = arith.constant dense<0.000000e+00> : vector<16x128xf32>
    %52 = tpu.matmul %50, %51, %cst_17 {dimension_numbers = #tpu.dot_dimension_numbers<[1], [0], [0], [1], [0, 0, 1, 1], [], []>} : vector<16x76xf32>, vector<76x128xf32>, vector<16x128xf32> -> vector<16x128xf32>
    %53 = arith.addf %14, %52 : vector<16x128xf32>
    %c0_18 = arith.constant 0 : index
    %c0_19 = arith.constant 0 : index
    %c0_20 = arith.constant 0 : index
    %54 = vector.load %arg5[%c0_18, %c0_19, %c0_20] : memref<1x16x128xf32, #tpu.memory_space<vmem>>, vector<1x16x128xf32>
    %55 = vector.shape_cast %54 : vector<1x16x128xf32> to vector<16x128xf32>
    %56 = vector.shape_cast %53 : vector<16x128xf32> to vector<1x16x128xf32>
    tpu.vector_store %arg5[%c0_18, %c0_19, %c0_20], %56 {strides = array<i32>} : memref<1x16x128xf32, #tpu.memory_space<vmem>>, vector<1x16x128xf32>,
    return
  }
  func.func @transform_0(%arg0: i32) -> (i32, i32, i32) {
    %c0_i32 = arith.constant 0 : i32
    %c0_i32_0 = arith.constant 0 : i32
    %c0_i32_1 = arith.constant 0 : i32
    return %arg0, %c0_i32, %c0_i32_0 : i32, i32, i32
  }
  func.func @transform_1(%arg0: i32) -> (i32, i32, i32) {
    %c0_i32 = arith.constant 0 : i32
    %c0_i32_0 = arith.constant 0 : i32
    %c0_i32_1 = arith.constant 0 : i32
    return %arg0, %c0_i32, %c0_i32_0 : i32, i32, i32
  }
  func.func @transform_2(%arg0: i32) -> (i32, i32, i32) {
    %c0_i32 = arith.constant 0 : i32
    %c0_i32_0 = arith.constant 0 : i32
    %c0_i32_1 = arith.constant 0 : i32
    %c0_i32_2 = arith.constant 0 : i32
    return %c0_i32, %c0_i32_0, %c0_i32_1 : i32, i32, i32
  }
  func.func @transform_3(%arg0: i32) -> (i32, i32) {
    %c0_i32 = arith.constant 0 : i32
    %c0_i32_0 = arith.constant 0 : i32
    %c0_i32_1 = arith.constant 0 : i32
    return %c0_i32, %c0_i32_0 : i32, i32
  }
  func.func @transform_4(%arg0: i32) -> (i32, i32, i32) {
    %c0_i32 = arith.constant 0 : i32
    %c0_i32_0 = arith.constant 0 : i32
    %c0_i32_1 = arith.constant 0 : i32
    return %arg0, %c0_i32, %c0_i32_0 : i32, i32, i32
  }
}

</mosaic_0001>

<bundles_post_ra>
// kernel: data_embedding_wo_pos.1
= control target key start
LH: loop header
LB: loop body
LE: loop exit
PB: predicated region body
PF: predicated region fallthrough
CT: control target
= control target key end

     0   :  { %9 = vsyncpa [#allocation3], 0  ;;  %s1195_s0 = inlined_call_operand.vmem [shape: f32[2,16,7], index: 0, kind: input, shape index: {}]   ;;  %s1196_s1 = inlined_call_operand.vmem [shape: s32[2,16,4], index: 1, kind: input, shape index: {}]   ;;  %s1197_s2 = inlined_call_operand.vmem [shape: f32[3,7,128], index: 2, kind: input, shape index: {}]   ;;  %s1198_s3 = inlined_call_operand.vmem [shape: f32[76,128], index: 3, kind: input, shape index: {}]   ;;  %s1199_s4 = inlined_call_operand.hbm [shape: f32[2,16,128], index: 4, kind: output, shape index: {}]  }
   0x1   :  { %11 = vsyncpa [#allocation3 + $0x1], 0  ;;  %s1024_s15 = smov 0   ;;  %s1026_s16 = smov 0  }
   0x2   :  { %s1028_s17 = smov 0   ;;  %s1030_s18 = smov 0  }
   0x3 LB: > { %s1045_s19 = sadd.s32 4294967295, %s988_s18   ;;  %s745_s20 = sadd.s32 4294967294, %s988_s18   ;;  %s988_s18 = sphi %s1030_s18, %s1205_s18   ;;  %s984_s17 = sphi %s1028_s17, %s1204_s17   ;;  %s980_s16 = sphi %s1026_s16, %s1203_s16   ;;  %s976_s15 = sphi %s1024_s15, %s1202_s15  }
   0x4   : > { %s1049_s21 = sadd.s32 1, %s988_s18   ;;  %s118_s22 = sadd.s32 1, %s984_s17 }
   0x5   : > { %s115_s23 = ssub.s32 %s988_s18, %s1049_s21  ;;  %p128_p0 = scmp.ne.s32.totalorder %s984_s17, %s980_s16 }
   0x6   : > { %p116_p1 = scmp.eq.s32.totalorder %s115_s23, 0  ;;  %p129_p2 = scmp.eq.s32.totalorder %s1045_s19, 1 }
   0x7   : > { %p134_p3 = scmp.ne.s32.totalorder %s980_s16, %s976_s15  ;;  %p135_p4 = scmp.eq.s32.totalorder %s745_s20, 1 }
   0x8   : > { %s1060_s24 = scalar_select %p116_p1, %s984_s17, %s118_s22  }
   0x9   : > { %p1062_p5 = por %p129_p2, %p128_p0  ;;  %p1066_p6 = por %p135_p4, %p134_p3 }
   0xa   : > { %p748_p7 = scmp.ge.s32.totalorder %s988_s18, 1  ;;  %p175_p8 = scmp.lt.s32.totalorder %s988_s18, 3 }
   0xc   : > { %p176_p9 = pnand %p748_p7, %p175_p8 }
   0xd   : > { %p206_p10 = scmp.lt.s32.totalorder (!%p176_p9), %s1045_s19, 1  ;;  %v990_v0 = vmov (!%p176_p9), 3   ;;  %v754_v1 = vld [vmem:[%s1197_s2 + $0x8] sm:$0x7f] (!%p176_p9)  ;;  %vm240_vm0 = vcmask (!%p176_p9), 1046528   ;;  %v220_v3 = vlaneseq (!%p176_p9)  ;;  %vm233_vm1 = vcmask (!%p176_p9), 56320  }
   0xe   : > { %179 = sbr.rel (%p176_p9) target bundleno = 407 (0x197), region = 36  ;;  %919 = vset.pattern.permute.xlu1 (!%p176_p9), %v990_v0  ;;  %918 = vset.pattern.permute.xlu0 (!%p176_p9), %v990_v0  ;;  %v230_v2 = vld [vmem:[%s1197_s2] sm:$0x7f] (!%p176_p9)  ;;  %v558_v13 = vld [vmem:[%s1198_s3 + $0x8] sm:$0xff] (!%p176_p9)  ;;  %v991_v16 = vmov (!%p176_p9), 2   ;;  %v559_v19 = vld [vmem:[%s1198_s3 + $0x10] sm:$0xff] (!%p176_p9) }
   0xf   : > { %805 = vmatprep.subr.msk.mxu0 (!%p176_p9), %vm240_vm0, %v754_v1  ;;  %v1084_v4 = vshrl.u32 (!%p176_p9), %v220_v3, 7  ;;  %v557_v9 = vld [vmem:[%s1198_s3] sm:$0xff] (!%p176_p9)  ;;  %v761_v18 = vld [vmem:[%s1197_s2 + $0x10] sm:$0x7f] (!%p176_p9)  ;;  %v560_v20 = vld [vmem:[%s1198_s3 + $0x18] sm:$0xff] (!%p176_p9)  ;;  %v992_v29 = vmov (!%p176_p9), 1  }
  0x10   : > { %806 = vmatpush3.msk.msra.mxu0 (!%p176_p9), %vm240_vm0, %v754_v1  ;;  %v843_v15 = vpack.c.bf16 (!%p176_p9), %v558_v13, %v557_v9  ;;  %v847_v23 = vpack.c.bf16 (!%p176_p9), %v560_v20, %v559_v19  ;;  %v561_v27 = vld [vmem:[%s1198_s3 + $0x20] sm:$0xff] (!%p176_p9)  ;;  %v562_v28 = vld [vmem:[%s1198_s3 + $0x28] sm:$0xff] (!%p176_p9)  ;;  %v563_v33 = vld [vmem:[%s1198_s3 + $0x30] sm:$0xff] (!%p176_p9)  ;;  %v993_v36 = vmov (!%p176_p9), 0   ;;  %vm574_vm4 = vcmask (!%p176_p9), 1043456   ;;  %s203_s27 = sand.u32 (!%p176_p9), 1, %s980_s16  }
  0x11   : > { %810 = vmatprep.subr.msk.mxu0 (!%p176_p9), %vm240_vm0, %v230_v2  ;;  %vm222_vm2 = vcmp.lt.s32.totalorder (!%p176_p9), %v1084_v4, 1  ;;  %vm227_vm3 = vcmp.lt.s32.totalorder (!%p176_p9), %v1084_v4, 7  ;;  %v851_v31 = vpack.c.bf16 (!%p176_p9), %v562_v28, %v561_v27  ;;  %v564_v34 = vld [vmem:[%s1198_s3 + $0x38] sm:$0xff] (!%p176_p9)  ;;  %v565_v39 = vld [vmem:[%s1198_s3 + $0x40] sm:$0xff] (!%p176_p9)  ;;  %v566_v40 = vld [vmem:[%s1198_s3 + $0x48] sm:$0xf] (!%p176_p9) }
  0x12   : > { %844 = vmatprep.subr.bf16.mxu1 (!%p176_p9), %v843_v15  ;;  %v855_v35 = vpack.c.bf16 (!%p176_p9), %v564_v34, %v563_v33  ;;  %v859_v41 = vpack.c.bf16 (!%p176_p9), %v566_v40, %v565_v39  ;;  %vm994_vm5 = vmmov (!%p176_p9), 1   ;;  %v494_v44 = vand.u32 (!%p176_p9), 127, %v220_v3  ;;  %s749_s28 = sshll.u32 (!%p176_p9), %s203_s27, 4 }
  0x13   : > { %846 = vmatpush3.bf16.msra.mxu1 (!%p176_p9), %v843_v15  ;;  %vm860_vm6 = vmpackc.low (!%p176_p9), %vm574_vm4, %vm994_vm5  ;;  %v995_v47 = vmov (!%p176_p9), 0.0   ;;  %vm567_vm14 = vcmask (!%p176_p9), 621568   ;;  %s205_s29 = scalar_lea.vmem (!%p176_p9), [#allocation2], %s749_s28 }
  0x14   : > { %848 = vmatprep.subr.bf16.mxu1 (!%p176_p9), %v847_v23  ;;  %s671_s30 = sshll.u32 (!%p176_p9), %s205_s29, 4  ;;  %s1147_s30 = int_to_ptr.vmem [resolvable:$true] %s671_s30 }
  0x15   : > { %s207_s5 = scalar_select %p206_p10, %s1045_s19, 1 }
  0x16   : > { %s926_s10 = scalar_lea.vmem %s1147_s30, 256 }
  0x17   : > { %s781_s6 = sshll.u32 %s207_s5, 4  ;;  %850 = vmatpush3.bf16.msra.mxu1 %v847_v23  ;;  %s783_s5 = sshll.u32 %s1045_s19, 8 }
  0x18   : > { %s215_s9 = scalar_lea.vmem %s1196_s1, %s781_s6  ;;  %s210_s12 = scalar_lea.vmem %s1195_s0, %s781_s6  ;;  %852 = vmatprep.subr.bf16.mxu1 %v851_v31 }
  0x19   : > { %v492_v5 = vld [vmem:[%s215_s9 + $0x8] sm:$0xff]  ;;  %v491_v6 = vld [vmem:[%s215_s9] sm:$0xff]  ;;  %s1152_s8 = scalar_lea.hbm %s1199_s4, %s783_s5  ;;  %s1154_s9 = scalar_lea.sflag [#allocation3], %s203_s27 }
  0x1a   : > { %v216_v7 = vld [vmem:[%s210_s12] sm:$0xff]  ;;  %499 = vperm.xlu1 %919, %v492_v5   ;;  %496 = vperm.xlu0 %918, %v491_v6   ;;  %v217_v8 = vld [vmem:[%s210_s12 + $0x8] sm:$0xff]  ;;  %v510_v10 = vadd.s32 24, %v492_v5  ;;  %v509_v11 = vadd.s32 24, %v491_v6  ;;  %v525_v24 = vadd.s32 31, %v491_v6  ;;  %v526_v25 = vadd.s32 31, %v492_v5  ;;  %p927_p11 = scmp.ne.s32.totalorder %s1147_s30, %s926_s10 }
  0x1b   : > { %v218_v12 = vrot.slane %v216_v7, 7  ;;  %807 = vmatprep.mubr.msk.f32.mxu0 %vm233_vm1, %v216_v7  ;;  %v219_v14 = vrot.slane %v217_v8, 7  ;;  %v225_v21 = vrot.slane %v216_v7, 1  ;;  %v226_v22 = vrot.slane %v217_v8, 1  ;;  %854 = vmatpush3.bf16.msra.mxu1 %v851_v31  ;;  %s996_s19 = smov [#allocation2]  }
  0x1c   : > { %808 = vmatmul.mubr.msk.f32.vlgmr.msra.gmra.mrb[0].mxu0 %vm233_vm1, %v217_v8  ;;  %v541_v32 = vadd.s32 63, %v491_v6  ;;  %v542_v37 = vadd.s32 63, %v492_v5  ;;  %856 = vmatprep.subr.bf16.mxu1 %v855_v35  ;;  %p928_p12 = pnand %p927_p11, %p1062_p5  ;;  %s930_s11 = sshll.u32 %s996_s19, 4  ;;  %s931_s11 = int_to_ptr.vmem [resolvable:$false] %s930_s11 }
  0x1d   : > { %811 = vmatpush3.msk.msra.mxu0 %vm240_vm0, %v230_v2  ;;  %v224_v17 = vsel %vm222_vm2, %v219_v14, %v218_v12  ;;  %v223_v26 = vsel %vm222_vm2, %v218_v12, %v219_v14  ;;  %v228_v30 = vsel %vm227_vm3, %v225_v21, %v226_v22  ;;  %v229_v38 = vsel %vm227_vm3, %v226_v22, %v225_v21  ;;  %s932_s12 = scalar_lea.vmem %s931_s11, 512  ;;  %p933_p0 = scmp.lt.s32.totalorder %s1147_s30, %s931_s11 }
  0x1e   : > { %921 = vset.pattern.permute.xlu1 %v991_v16  ;;  %920 = vset.pattern.permute.xlu0 %v991_v16  ;;  %p929_p13 = pneg %p928_p12  ;;  %p934_p1 = scmp.lt.s32.totalorder %s932_s12, %s926_s10 }
  0x1f   : > { %515 = vperm.xlu1 %921, %v510_v10   ;;  %512 = vperm.xlu0 %920, %v509_v11  }
  0x20   : > { %812 = vmatprep.mubr.msk.f32.mxu0 %vm233_vm1, %v224_v17  ;;  %815 = vmatprep.subr.msk.mxu0 %vm240_vm0, %v761_v18  ;;  %p935_p2 = por %p934_p1, %p933_p0 }
  0x21   : > { %858 = vmatpush3.bf16.msra.mxu1 %v855_v35 }
  0x22   : > { %861 = vmatprep.subr.msk.bf16.mxu1 %vm860_vm6, %v859_v41  ;;  %p936_p3 = pnand %p935_p2, %p929_p13 }
  0x23   : > { %922 = vset.pattern.permute.xlu1 %v992_v29  ;;  %923 = vset.pattern.permute.xlu0 %v992_v29 }
  0x24   : > { %528 = vperm.xlu1 %922, %v525_v24   ;;  %531 = vperm.xlu0 %923, %v526_v25  }
  0x25   : > { %813 = vmatmul.mubr.msk.f32.vlgmr.msra.gmra.mrb[0].mxu0 %vm233_vm1, %v223_v26  ;;  %864 = vmatpush3.bf16.msk.msra.mxu1 %vm860_vm6, %v859_v41 }
  0x26   : > { %816 = vmatpush3.msk.msra.mxu0 %vm240_vm0, %v761_v18  ;;  %817 = vmatprep.mubr.msk.f32.mxu0 %vm233_vm1, %v228_v30 }
  0x28   : > { %924 = vset.pattern.permute.xlu1 %v993_v36  ;;  %925 = vset.pattern.permute.xlu0 %v993_v36 }
  0x29   : > { %544 = vperm.xlu1 %924, %v541_v32  }
  0x2d   : > { %547 = vperm.xlu1 %924, %v542_v37   ;;  %818 = vmatmul.mubr.msk.f32.vlgmr.msra.gmra.mrb[0].mxu0 %vm233_vm1, %v229_v38 }
  0x99   : > { %v500_v42 = vpop.permute.xlu1 %499  ;;  %v497_v43 = vpop.permute.xlu0 %496 }
  0x9a   : > { %vm501_vm7 = vcmp.eq.s32.totalorder %v494_v44, %v497_v43  ;;  %vm502_vm11 = vcmp.eq.s32.totalorder %v494_v44, %v500_v42 }
  0x9b   : > { %v765_v48 = vsel %vm501_vm7, 1.0, %v995_v47  ;;  %v766_v57 = vsel %vm502_vm11, 1.0, %v995_v47 }
  0x9e   : > { %v516_v45 = vpop.permute.xlu1 %515  ;;  %v513_v46 = vpop.permute.xlu0 %512 }
  0x9f   : > { %vm517_vm8 = vcmp.eq.s32.totalorder %v494_v44, %v513_v46  ;;  %vm518_vm10 = vcmp.eq.s32.totalorder %v494_v44, %v516_v45 }
  0xa0   : > { %v767_v49 = vsel %vm517_vm8, 1.0, %v995_v47  ;;  %v768_v54 = vsel %vm518_vm10, 1.0, %v995_v47 }
  0xa1   : > { %v523_v52 = vadd.f32 %v767_v49, %v765_v48  ;;  %v524_v60 = vadd.f32 %v768_v54, %v766_v57 }
  0xa3   : > { %v529_v50 = vpop.permute.xlu1 %528  ;;  %v532_v51 = vpop.permute.xlu0 %531 }
  0xa4   : > { %vm533_vm9 = vcmp.eq.s32.totalorder %v494_v44, %v529_v50  ;;  %vm534_vm12 = vcmp.eq.s32.totalorder %v494_v44, %v532_v51 }
  0xa5   : > { %v769_v53 = vsel %vm533_vm9, 1.0, %v995_v47  ;;  %v770_v58 = vsel %vm534_vm12, 1.0, %v995_v47 }
  0xa6   : > { %v539_v56 = vadd.f32 %v769_v53, %v523_v52  ;;  %v540_v63 = vadd.f32 %v770_v58, %v524_v60 }
  0xa8   : > { %v545_v55 = vpop.permute.xlu1 %544 }
  0xa9   : > { %vm549_vm13 = vcmp.eq.s32.totalorder %v494_v44, %v545_v55 }
  0xaa   : > { %v771_v59 = vsel %vm549_vm13, 1.0, %v995_v47 }
  0xab   : > { %v555_v61 = vadd.f32 %v771_v59, %v539_v56 }
  0xac   : > { %v548_v62 = vpop.permute.xlu1 %547 }
  0xad   : > { %vm550_vm15 = vcmp.eq.s32.totalorder %v494_v44, %v548_v62  ;;  %840 = vmatprep.mubr.msk.f32.mxu1 %vm567_vm14, %v555_v61 }
  0xae   : > { %v772_v0 = vsel %vm550_vm15, 1.0, %v995_v47 }
  0xaf   : > { %v556_v1 = vadd.f32 %v772_v0, %v540_v63 }
  0xb1   : > { %841 = vmatmul.mubr.msk.f32.vlgmr.msra.gmra.mrb[0].mxu1 %vm567_vm14, %v556_v1 }
 0x100   : > { %v819_v2 = vpop.f32.mrb[0].mxu0 }
 0x101   : > { %v480_v3 = vpop.f32.mrb[1].mxu0 }
 0x184   : > { %v842_v4 = vpop.f32.mrb[0].mxu1 }
 0x185   : > { %v865_v5 = vadd.f32 %v842_v4, %v819_v2  ;;  %v644_v6 = vpop.f32.mrb[1].mxu1 }
 0x186   : > { %v866_v7 = vadd.f32 %v644_v6, %v480_v3 }
 0x187   : > { %656 = vst [vmem:[%s205_s29 + $0x8] sm:$0xff] %v865_v5 }
 0x188   : > { %655 = vst [vmem:[%s205_s29] sm:$0xff] %v866_v7 }
 0x189   : > { %939 = shalt.err (!%p936_p3)
}
 0x18a   : > { %s940_s13 = scalar_lea.hbm %s1152_s8, 256  ;;  %s944_s22 = scalar_lea.hbm %s1199_s4, 512 }
 0x18b   : > { %p941_p4 = scmp.ne.s32.totalorder %s1152_s8, %s940_s13  ;;  %p945_p9 = scmp.lt.u32.totalorder %s1152_s8, %s1199_s4 }
 0x18c   : > { %p946_p10 = scmp.lt.u32.totalorder %s944_s22, %s940_s13  ;;  %p948_p12 = scmp.lt.u32.totalorder %s940_s13, %s1152_s8 }
 0x18d   : > { %p942_p7 = pnand %p941_p4, %p1062_p5 }
 0x18e   : > { %p947_p11 = por %p946_p10, %p945_p9 }
 0x18f   : > { %p943_p8 = pneg %p942_p7 }
 0x190   : > { %p949_p13 = por %p948_p12, %p947_p11 }
 0x192   : > { %p950_p0 = pnand %p949_p13, %p943_p8 }
 0x194   : > { %953 = shalt.err (!%p950_p0)
}
 0x195   : > { %s997_s28 = smov 128   ;;  %s998_s29 = smov 8  }
 0x196   : > { %871 = dma.vmem_to_hbm [thread:$0]  (%p1062_p5), %s1147_s30, 256, %s1152_s8, %s1154_s9, %s997_s28, %s997_s28, %s998_s29  }
 0x197 PF: > { %p877_p1 = scmp.ge.s32.totalorder %s988_s18, 2  ;;  %s686_s5 = sand.u32 1, %s976_s15  }
 0x198   : > { %s687_s6 = scalar_lea.sflag [#allocation3], %s686_s5 }
 0x199   : > { %p874_p2 = pnand %p877_p1, %p1066_p6 }
 0x19b   : > { %971 = dma.done.wait (!%p874_p2), %s687_s6, 256  }
 0x19c   : > { %973 = vsyncadd (!%p874_p2), %s687_s6, 4294967040  ;;  %p14_p3 = scmp.ge.s32.totalorder %s1049_s21, 4   ;;  %s1202_s15 = smov %s980_s16 }
 0x19d   : > { %s1203_s16 = smov %s984_s17  ;;  %s1204_s17 = smov %s1060_s24 }
 0x19e   : > { %s1205_s18 = smov %s1049_s21  ;;  %16 = sbr.rel (!%p14_p3) target bundleno = 3 (0x3), region = 76 }
 0x1a5   :  { %692 = vsyncpa [#allocation3], 1 }
 0x1a6   :  { %694 = vsyncpa [#allocation3 + $0x1], 1 }

</bundles_post_ra>
